<compile_context>
chip_gen: v7x
topology: tpu7x:2x2x1
jax: 0.10.0
libtpu: 0.0.40
codegen_flags: <defaults>
</compile_context>

<pallas_src>
import functools

import jax
import jax.numpy as jnp
from jax.experimental import pallas as pl
from jax.experimental.pallas import tpu as pltpu


def _mlp_core(x_ref, w1_ref, b1_ref, w2_ref, b2_ref):
    """Shared body: returns (z1, z2, z3, z) as f32 values for the current row tile."""
    x = x_ref[...]
    z1 = jnp.dot(x, w1_ref[...], preferred_element_type=jnp.float32) + b1_ref[...]
    z2 = jnp.maximum(z1, 0.0)
    z3 = jnp.dot(z2, w2_ref[...], preferred_element_type=jnp.float32) + b2_ref[...]
    # PyTorch F.normalize(dim=1): x / max(||x||, 1e-12)  ==  x * rsqrt(max(||x||^2, 1e-24))
    ss = jnp.sum(z3 * z3, axis=1, keepdims=True)
    z = z3 * jax.lax.rsqrt(jnp.maximum(ss, 1e-24))
    return z1, z2, z3, z


def _mlp_fast_kernel(x_ref, w1_ref, b1_ref, w2_ref, b2_ref, z_ref):
    # Only the normalized output goes back to HBM (~10x less write traffic).
    _, _, _, z = _mlp_core(x_ref, w1_ref, b1_ref, w2_ref, b2_ref)
    z_ref[...] = z.astype(z_ref.dtype)


def _mlp_debug_kernel(x_ref, w1_ref, b1_ref, w2_ref, b2_ref,
                      z1_ref, z2_ref, z3_ref, z_ref):
    # Debug variant: also materializes the three intermediates (module's `outputs` dict).
    z1, z2, z3, z = _mlp_core(x_ref, w1_ref, b1_ref, w2_ref, b2_ref)
    z1_ref[...] = z1.astype(z1_ref.dtype)
    z2_ref[...] = z2.astype(z2_ref.dtype)
    z3_ref[...] = z3.astype(z3_ref.dtype)
    z_ref[...] = z.astype(z_ref.dtype)


_MAX_TILE_N = 2048  # rows per grid step; ~1.5 KiB live VMEM per row -> fits every gen


@functools.partial(jax.jit, static_argnames=("return_intermediates",))
def modified_network_forward(x, w1, b1, w2, b2, return_intermediates=True):
    """x: (N, input_dim); w1: (input_dim, 64); b1: (1, 64);
       w2: (64, feature_dim); b2: (1, feature_dim)."""
    n, input_dim = x.shape
    hidden = w1.shape[1]
    feature_dim = w2.shape[1]
    dt = x.dtype

    # Choose a batch tile (multiple of 8) and pad the batch so the grid divides evenly.
    n8 = ((n + 7) // 8) * 8
    tile_n = min(_MAX_TILE_N, n8)
    n_pad = ((n8 + tile_n - 1) // tile_n) * tile_n
    if n_pad != n:
        x = jnp.pad(x, ((0, n_pad - n), (0, 0)))
    grid = (n_pad // tile_n,)

    # Weights / biases stay VMEM-resident across the whole grid.
    in_specs = [
        pl.BlockSpec((tile_n, input_dim), lambda i: (i, 0)),     # x: streamed by row tile
        pl.BlockSpec((input_dim, hidden), lambda i: (0, 0)),     # w1
        pl.BlockSpec((1, hidden), lambda i: (0, 0)),             # b1
        pl.BlockSpec((hidden, feature_dim), lambda i: (0, 0)),   # w2
        pl.BlockSpec((1, feature_dim), lambda i: (0, 0)),        # b2
    ]
    compiler_params = pltpu.CompilerParams(
        dimension_semantics=("parallel",),   # lets v7x shard the batch grid over 2 TCs
    )

    if return_intermediates:
        out_shapes = (
            jax.ShapeDtypeStruct((n_pad, hidden), dt),        # linear1_output
            jax.ShapeDtypeStruct((n_pad, hidden), dt),        # relu_output
            jax.ShapeDtypeStruct((n_pad, feature_dim), dt),   # linear2_output
            jax.ShapeDtypeStruct((n_pad, feature_dim), dt),   # normalized_output
        )
        out_specs = (
            pl.BlockSpec((tile_n, hidden), lambda i: (i, 0)),
            pl.BlockSpec((tile_n, hidden), lambda i: (i, 0)),
            pl.BlockSpec((tile_n, feature_dim), lambda i: (i, 0)),
            pl.BlockSpec((tile_n, feature_dim), lambda i: (i, 0)),
        )
        z1, z2, z3, z = pl.pallas_call(
            _mlp_debug_kernel,
            out_shape=out_shapes,
            grid=grid,
            in_specs=in_specs,
            out_specs=out_specs,
            compiler_params=compiler_params,
        )(x, w1, b1, w2, b2)
        z1, z2, z3, z = z1[:n], z2[:n], z3[:n], z[:n]
        outputs = {
            "linear1_output": z1,
            "relu_output": z2,
            "linear2_output": z3,
            "normalized_output": z,
        }
        return z, outputs

    # Fast path: only the normalized embedding is written to HBM.
    z = pl.pallas_call(
        _mlp_fast_kernel,
        out_shape=jax.ShapeDtypeStruct((n_pad, feature_dim), dt),
        grid=grid,
        in_specs=in_specs,
        out_specs=pl.BlockSpec((tile_n, feature_dim), lambda i: (i, 0)),
        compiler_params=compiler_params,
    )(x, w1, b1, w2, b2)
    z = z[:n]
    return z, {"normalized_output": z}


def kaiming_normal(key, out_features, in_features, dtype=jnp.float32):
    # nn.init.kaiming_normal_ (fan_in, leaky_relu a=0): std = sqrt(2 / fan_in)
    std = (2.0 / in_features) ** 0.5
    return std * jax.random.normal(key, (out_features, in_features), dtype=dtype)


if __name__ == "__main__":
    input_dim = 32
    feature_dim = 16
    hidden = 64
    batch = 8

    key = jax.random.PRNGKey(0)
    k_x, k_w1, k_w2 = jax.random.split(key, 3)

    x = jax.random.normal(k_x, (batch, input_dim), dtype=jnp.float32)

    # Parameters, PyTorch convention: weight is (out, in); kernel consumes transposed.
    w1_pt = kaiming_normal(k_w1, hidden, input_dim)       # (64, input_dim)
    b1_pt = jnp.zeros((hidden,), jnp.float32)
    w2_pt = kaiming_normal(k_w2, feature_dim, hidden)     # (feature_dim, 64)
    b2_pt = jnp.zeros((feature_dim,), jnp.float32)

    w1 = w1_pt.T                      # (input_dim, 64)
    b1 = b1_pt.reshape(1, hidden)
    w2 = w2_pt.T                      # (64, feature_dim)
    b2 = b2_pt.reshape(1, feature_dim)

    # Full module semantics (all four outputs).
    z, outputs = modified_network_forward(x, w1, b1, w2, b2, return_intermediates=True)
    jax.block_until_ready(z)
    jax.block_until_ready(outputs)

    # Fast path (only normalized output written to HBM).
    z_fast, _ = modified_network_forward(x, w1, b1, w2, b2, return_intermediates=False)
    jax.block_until_ready(z_fast)

    # Reference check against plain JAX
    z1_ref = x @ w1 + b1
    z2_ref = jnp.maximum(z1_ref, 0.0)
    z3_ref = z2_ref @ w2 + b2
    z_ref = z3_ref / jnp.maximum(
        jnp.sqrt(jnp.sum(z3_ref * z3_ref, axis=1, keepdims=True)), 1e-12)

    assert jnp.allclose(outputs["linear1_output"], z1_ref, atol=1e-5, rtol=1e-5)
    assert jnp.allclose(outputs["relu_output"], z2_ref, atol=1e-5, rtol=1e-5)
    assert jnp.allclose(outputs["linear2_output"], z3_ref, atol=1e-5, rtol=1e-5)
    assert jnp.allclose(z, z_ref, atol=1e-5, rtol=1e-5)
    assert jnp.allclose(z_fast, z_ref, atol=1e-5, rtol=1e-5)

    print("KERNEL_OK")
</pallas_src>

<mosaic_0001>
module attributes {stable_mosaic.version = 11 : i64} {
  func.func @_mlp_debug_kernel(%arg0: i32, %arg1: memref<8x32xf32, #tpu.memory_space<vmem>>, %arg2: memref<32x64xf32, #tpu.memory_space<vmem>>, %arg3: memref<1x64xf32, #tpu.memory_space<vmem>>, %arg4: memref<64x16xf32, #tpu.memory_space<vmem>>, %arg5: memref<1x16xf32, #tpu.memory_space<vmem>>, %arg6: memref<8x64xf32, #tpu.memory_space<vmem>>, %arg7: memref<8x64xf32, #tpu.memory_space<vmem>>, %arg8: memref<8x16xf32, #tpu.memory_space<vmem>>, %arg9: memref<8x16xf32, #tpu.memory_space<vmem>>) attributes {dimension_semantics = [#tpu.dimension_semantics<parallel>], iteration_bounds = array<i64: 1>, scalar_prefetch = 0 : i64, scratch_operands = 0 : i64, tpu.core_type = #tpu.core_type<tc>, window_params = [{transform_indices = @transform_0, window_bounds = array<i64: 8, 32>}, {pipeline_mode = #tpu.pipeline_mode<synchronous>, transform_indices = @transform_1, window_bounds = array<i64: 32, 64>}, {pipeline_mode = #tpu.pipeline_mode<synchronous>, transform_indices = @transform_2, window_bounds = array<i64: 1, 64>}, {pipeline_mode = #tpu.pipeline_mode<synchronous>, transform_indices = @transform_3, window_bounds = array<i64: 64, 16>}, {pipeline_mode = #tpu.pipeline_mode<synchronous>, transform_indices = @transform_4, window_bounds = array<i64: 1, 16>}, {transform_indices = @transform_5, window_bounds = array<i64: 8, 64>}, {transform_indices = @transform_6, window_bounds = array<i64: 8, 64>}, {transform_indices = @transform_7, window_bounds = array<i64: 8, 16>}, {transform_indices = @transform_8, window_bounds = array<i64: 8, 16>}]} {
    %c0 = arith.constant 0 : index
    %c0_0 = arith.constant 0 : index
    %0 = vector.load %arg1[%c0, %c0_0] : memref<8x32xf32, #tpu.memory_space<vmem>>, vector<8x32xf32>
    %c0_1 = arith.constant 0 : index
    %c0_2 = arith.constant 0 : index
    %1 = vector.load %arg2[%c0_1, %c0_2] : memref<32x64xf32, #tpu.memory_space<vmem>>, vector<32x64xf32>
    %cst = arith.constant dense<0.000000e+00> : vector<8x64xf32>
    %2 = tpu.matmul %0, %1, %cst {dimension_numbers = #tpu.dot_dimension_numbers<[1], [0], [0], [1], [0, 0, 1, 1], [], []>} : vector<8x32xf32>, vector<32x64xf32>, vector<8x64xf32> -> vector<8x64xf32>
    %c0_3 = arith.constant 0 : index
    %c0_4 = arith.constant 0 : index
    %3 = vector.load %arg3[%c0_3, %c0_4] : memref<1x64xf32, #tpu.memory_space<vmem>>, vector<1x64xf32>
    %4 = vector.broadcast %3 : vector<1x64xf32> to vector<8x64xf32>
    %5 = arith.addf %2, %4 : vector<8x64xf32>
    %cst_5 = arith.constant 0.000000e+00 : f32
    %6 = vector.broadcast %cst_5 : f32 to vector<8x64xf32>
    %7 = arith.maximumf %5, %6 : vector<8x64xf32>
    %c0_6 = arith.constant 0 : index
    %c0_7 = arith.constant 0 : index
    %8 = vector.load %arg4[%c0_6, %c0_7] : memref<64x16xf32, #tpu.memory_space<vmem>>, vector<64x16xf32>
    %cst_8 = arith.constant dense<0.000000e+00> : vector<8x16xf32>
    %9 = tpu.matmul %7, %8, %cst_8 {dimension_numbers = #tpu.dot_dimension_numbers<[1], [0], [0], [1], [0, 0, 1, 1], [], []>} : vector<8x64xf32>, vector<64x16xf32>, vector<8x16xf32> -> vector<8x16xf32>
    %c0_9 = arith.constant 0 : index
    %c0_10 = arith.constant 0 : index
    %10 = vector.load %arg5[%c0_9, %c0_10] : memref<1x16xf32, #tpu.memory_space<vmem>>, vector<1x16xf32>
    %11 = vector.broadcast %10 : vector<1x16xf32> to vector<8x16xf32>
    %12 = arith.addf %9, %11 : vector<8x16xf32>
    %13 = arith.mulf %12, %12 : vector<8x16xf32>
    %cst_11 = arith.constant dense<0.000000e+00> : vector<8xf32>
    %14 = vector.multi_reduction <add>, %13, %cst_11 [1] : vector<8x16xf32> to vector<8xf32>
    %15 = vector.shape_cast %14 : vector<8xf32> to vector<8x1xf32>
    %cst_12 = arith.constant 1.000000e-24 : f32
    %16 = vector.broadcast %cst_12 : f32 to vector<8x1xf32>
    %17 = arith.maximumf %15, %16 : vector<8x1xf32>
    %18 = math.rsqrt %17 : vector<8x1xf32>
    %19 = vector.broadcast %18 : vector<8x1xf32> to vector<8x16xf32>
    %20 = arith.mulf %12, %19 : vector<8x16xf32>
    %c0_13 = arith.constant 0 : index
    %c0_14 = arith.constant 0 : index
    %21 = vector.load %arg6[%c0_13, %c0_14] : memref<8x64xf32, #tpu.memory_space<vmem>>, vector<8x64xf32>
    tpu.vector_store %arg6[%c0_13, %c0_14], %5 {strides = array<i32>} : memref<8x64xf32, #tpu.memory_space<vmem>>, vector<8x64xf32>,
    %c0_15 = arith.constant 0 : index
    %c0_16 = arith.constant 0 : index
    %22 = vector.load %arg7[%c0_15, %c0_16] : memref<8x64xf32, #tpu.memory_space<vmem>>, vector<8x64xf32>
    tpu.vector_store %arg7[%c0_15, %c0_16], %7 {strides = array<i32>} : memref<8x64xf32, #tpu.memory_space<vmem>>, vector<8x64xf32>,
    %c0_17 = arith.constant 0 : index
    %c0_18 = arith.constant 0 : index
    %23 = vector.load %arg8[%c0_17, %c0_18] : memref<8x16xf32, #tpu.memory_space<vmem>>, vector<8x16xf32>
    tpu.vector_store %arg8[%c0_17, %c0_18], %12 {strides = array<i32>} : memref<8x16xf32, #tpu.memory_space<vmem>>, vector<8x16xf32>,
    %c0_19 = arith.constant 0 : index
    %c0_20 = arith.constant 0 : index
    %24 = vector.load %arg9[%c0_19, %c0_20] : memref<8x16xf32, #tpu.memory_space<vmem>>, vector<8x16xf32>
    tpu.vector_store %arg9[%c0_19, %c0_20], %20 {strides = array<i32>} : memref<8x16xf32, #tpu.memory_space<vmem>>, vector<8x16xf32>,
    return
  }
  func.func @transform_0(%arg0: i32) -> (i32, i32) {
    %c0_i32 = arith.constant 0 : i32
    %c0_i32_0 = arith.constant 0 : i32
    return %arg0, %c0_i32 : i32, i32
  }
  func.func @transform_1(%arg0: i32) -> (i32, i32) {
    %c0_i32 = arith.constant 0 : i32
    %c0_i32_0 = arith.constant 0 : i32
    %c0_i32_1 = arith.constant 0 : i32
    return %c0_i32, %c0_i32_0 : i32, i32
  }
  func.func @transform_2(%arg0: i32) -> (i32, i32) {
    %c0_i32 = arith.constant 0 : i32
    %c0_i32_0 = arith.constant 0 : i32
    %c0_i32_1 = arith.constant 0 : i32
    return %c0_i32, %c0_i32_0 : i32, i32
  }
  func.func @transform_3(%arg0: i32) -> (i32, i32) {
    %c0_i32 = arith.constant 0 : i32
    %c0_i32_0 = arith.constant 0 : i32
    %c0_i32_1 = arith.constant 0 : i32
    return %c0_i32, %c0_i32_0 : i32, i32
  }
  func.func @transform_4(%arg0: i32) -> (i32, i32) {
    %c0_i32 = arith.constant 0 : i32
    %c0_i32_0 = arith.constant 0 : i32
    %c0_i32_1 = arith.constant 0 : i32
    return %c0_i32, %c0_i32_0 : i32, i32
  }
  func.func @transform_5(%arg0: i32) -> (i32, i32) {
    %c0_i32 = arith.constant 0 : i32
    %c0_i32_0 = arith.constant 0 : i32
    return %arg0, %c0_i32 : i32, i32
  }
  func.func @transform_6(%arg0: i32) -> (i32, i32) {
    %c0_i32 = arith.constant 0 : i32
    %c0_i32_0 = arith.constant 0 : i32
    return %arg0, %c0_i32 : i32, i32
  }
  func.func @transform_7(%arg0: i32) -> (i32, i32) {
    %c0_i32 = arith.constant 0 : i32
    %c0_i32_0 = arith.constant 0 : i32
    return %arg0, %c0_i32 : i32, i32
  }
  func.func @transform_8(%arg0: i32) -> (i32, i32) {
    %c0_i32 = arith.constant 0 : i32
    %c0_i32_0 = arith.constant 0 : i32
    return %arg0, %c0_i32 : i32, i32
  }
}

</mosaic_0001>

<bundles_post_ra>
// kernel: modified_network_forward.1
= control target key start
LH: loop header
LB: loop body
LE: loop exit
PB: predicated region body
PF: predicated region fallthrough
CT: control target
= control target key end

     0   :  { %14 = vsyncpa [#allocation3], 0  ;;  %v403_v3 = vmov 0.0|0.0   ;;  %vm404_vm0 = vmmov 0   ;;  %v405_v6 = vmov 0.0   ;;  %s541_s0 = inlined_call_operand.vmem [shape: f32[8,32], index: 0, kind: input, shape index: {}]   ;;  %s542_s1 = inlined_call_operand.vmem [shape: f32[32,64], index: 1, kind: input, shape index: {}]   ;;  %s543_s2 = inlined_call_operand.vmem [shape: f32[1,64], index: 2, kind: input, shape index: {}]   ;;  %s544_s3 = inlined_call_operand.vmem [shape: f32[64,16], index: 3, kind: input, shape index: {}]   ;;  %s545_s4 = inlined_call_operand.vmem [shape: f32[1,16], index: 4, kind: input, shape index: {}]   ;;  %s546_s5 = inlined_call_operand.hbm [shape: f32[8,64], index: 5, kind: output, shape index: {0}]   ;;  %s547_s6 = inlined_call_operand.hbm [shape: f32[8,64], index: 6, kind: output, shape index: {1}]   ;;  %s548_s7 = inlined_call_operand.hbm [shape: f32[8,16], index: 7, kind: output, shape index: {2}]   ;;  %s549_s8 = inlined_call_operand.vmem [shape: f32[8,16], index: 8, kind: output, shape index: {3}]  }
   0x1   :  { %v27_v0 = vld [vmem:[%s542_s1] sm:$0xff]  ;;  %v28_v1 = vld [vmem:[%s542_s1 + $0x8] sm:$0xff]  ;;  %v29_v2 = vld [vmem:[%s542_s1 + $0x10] sm:$0xff]  ;;  %307 = vmatprep.subr.bf16.mxu0 %v403_v3  ;;  %285 = vmatprep.mubr.msk.f32.mxu0 %vm404_vm0, %v405_v6 }
   0x2   :  { %v308_v4 = vpack.c.bf16 %v28_v1, %v27_v0  ;;  %v30_v5 = vld [vmem:[%s542_s1 + $0x18] sm:$0xff]  ;;  %v113_v7 = vld [vmem:[%s544_s3] sm:$0xff]  ;;  %313 = vmatprep.subr.bf16.mxu1 %v403_v3  ;;  %v114_v8 = vld [vmem:[%s544_s3 + $0x8] sm:$0xff]  ;;  %304 = vmatprep.mubr.msk.f32.mxu1 %vm404_vm0, %v405_v6 }
   0x3   :  { %v115_v9 = vld [vmem:[%s544_s3 + $0x10] sm:$0xff]  ;;  %v116_v10 = vld [vmem:[%s544_s3 + $0x18] sm:$0xff]  ;;  %v311_v11 = vpack.c.bf16 %v30_v5, %v29_v2  ;;  %v314_v12 = vpack.c.bf16 %v114_v8, %v113_v7 }
   0x4   :  { %309 = vmatpush3.bf16.msra.mxu0 %v308_v4 }
   0x5   :  { %310 = vmatprep.subr.bf16.mxu0 %v403_v3 }
   0x6   :  { %15 = vsyncpa [#allocation5], 0  ;;  %315 = vmatpush3.bf16.msra.mxu1 %v314_v12  ;;  %v317_v13 = vpack.c.bf16 %v116_v10, %v115_v9  ;;  %v117_v14 = vld [vmem:[%s544_s3 + $0x20] sm:$0xff]  ;;  %v118_v15 = vld [vmem:[%s544_s3 + $0x28] sm:$0xff]  ;;  %vm38_vm1 = vcmask 261120   ;;  %vm128_vm2 = vcmask 523264  }
   0x7   :  { %316 = vmatprep.subr.bf16.mxu1 %v403_v3  ;;  %v26_v16 = vld [vmem:[%s541_s0] sm:$0xff]  ;;  %v320_v17 = vpack.c.bf16 %v118_v15, %v117_v14  ;;  %v119_v18 = vld [vmem:[%s544_s3 + $0x30] sm:$0xff]  ;;  %v120_v19 = vld [vmem:[%s544_s3 + $0x38] sm:$0xff]  ;;  %vm203_vm3 = vcmask 130048   ;;  %s407_s11 = smov [#allocation2]  }
   0x8   :  { %312 = vmatpush3.bf16.msra.mxu0 %v311_v11  ;;  %v323_v20 = vpack.c.bf16 %v120_v19, %v119_v18  ;;  %v259_v21 = vld [vmem:[%s543_s2] ss:$0 sm:$0xff]  ;;  %s406_s2 = smov [#allocation4]   ;;  %s220_s12 = sshll.u32 %s407_s11, 4  ;;  %s221_s12 = int_to_ptr.vmem [resolvable:$true] %s220_s12 }
   0x9   :  { %v261_v26 = vld [vmem:[%s545_s4] ss:$0 sm:$0xff]  ;;  %s230_s3 = sshll.u32 %s406_s2, 4  ;;  %s231_s3 = int_to_ptr.vmem [resolvable:$true] %s230_s3 }
   0xa   :  { %318 = vmatpush3.bf16.msra.mxu1 %v317_v13  ;;  %s333_s13 = scalar_lea.vmem %s231_s3, 128  ;;  %p338_p1 = scmp.lt.s32.totalorder %s231_s3, %s231_s3 }
   0xb   :  { %286 = vmatmul.mubr.msk.f32.vlgmr.msra.gmra.mrb[0].mxu0 %vm38_vm1, %v26_v16  ;;  %319 = vmatprep.subr.bf16.mxu1 %v403_v3  ;;  %p334_p0 = scmp.ne.s32.totalorder %s231_s3, %s333_s13  ;;  %p339_p2 = scmp.lt.s32.totalorder %s333_s13, %s333_s13 }
   0xd   :  { %p340_p3 = por %p339_p2, %p338_p1 }
   0xe   :  { %321 = vmatpush3.bf16.msra.mxu1 %v320_v17 }
   0xf   :  { %322 = vmatprep.subr.bf16.mxu1 %v403_v3  ;;  %p341_p4 = pnand %p340_p3, %p334_p0 }
  0x12   :  { %324 = vmatpush3.bf16.msra.mxu1 %v323_v20 }
  0xde   :  { %v108_v22 = vpop.f32.mrb[0].mxu0 }
  0xdf   :  { %v109_v23 = vadd.f32 %v259_v21, %v108_v22  ;;  %v287_v24 = vpop.f32.mrb[1].mxu0 }
  0xe1   :  { %v112_v25 = vmax.f32 %v109_v23, 0.0  ;;  %210 = vst.msk [vmem:[#allocation2] sm:$0xff] %vm128_vm2, %v109_v23 }
  0xe3   :  { %305 = vmatmul.mubr.msk.f32.vlgmr.msra.gmra.mrb[0].mxu1 %vm128_vm2, %v112_v25  ;;  %211 = vst.msk [vmem:[#allocation4] sm:$0xff] %vm128_vm2, %v112_v25 }
 0x1b6   :  { %v198_v27 = vpop.f32.mrb[0].mxu1 }
 0x1b7   :  { %v199_v28 = vadd.f32 %v261_v26, %v198_v27  ;;  %v306_v29 = vpop.f32.mrb[1].mxu1 }
 0x1b9   :  { %v202_v30 = vmul.f32 %v199_v28, %v199_v28  ;;  %212 = vst.msk [vmem:[#allocation6] sm:$0xff] %vm203_vm3, %v199_v28 }
 0x1bb   :  { %v204_v31 = vsel %vm203_vm3, %v202_v30, 0.0 }
 0x1bc   :  { %205 = vadd.xlane.f32.xlu0 %v204_v31 }
 0x1bd   :  { %344 = shalt.err (!%p341_p4)
}
 0x1be   :  { %s345_s15 = scalar_lea.hbm %s547_s6, 128 }
 0x1bf   :  { %p346_p5 = scmp.ne.s32.totalorder %s547_s6, %s345_s15  ;;  %p349_p6 = scmp.lt.u32.totalorder %s345_s15, %s547_s6 }
 0x1c1   :  { %p351_p7 = pnand %p349_p6, %p346_p5 }
 0x1c3   :  { %354 = shalt.err (!%p351_p7)
}
 0x1c4   :  { %233 = dma.vmem_to_hbm [thread:$0]  %s231_s3, 128, %s547_s6, [#allocation5]  }
 0x1c5   :  { %s355_s21 = scalar_lea.vmem %s221_s12, 128  ;;  %p360_p9 = scmp.lt.s32.totalorder %s221_s12, %s221_s12 }
 0x1c6   :  { %p356_p8 = scmp.ne.s32.totalorder %s221_s12, %s355_s21  ;;  %p361_p10 = scmp.lt.s32.totalorder %s355_s21, %s355_s21 }
 0x1c8   :  { %p362_p11 = por %p361_p10, %p360_p9 }
 0x1ca   :  { %p363_p12 = pnand %p362_p11, %p356_p8 }
 0x1cc   :  { %366 = shalt.err (!%p363_p12)
}
 0x1cd   :  { %s367_s24 = scalar_lea.hbm %s546_s5, 128 }
 0x1ce   :  { %p368_p13 = scmp.ne.s32.totalorder %s546_s5, %s367_s24  ;;  %p371_p0 = scmp.lt.u32.totalorder %s367_s24, %s546_s5 }
 0x1d0   :  { %p373_p1 = pnand %p371_p0, %p368_p13 }
 0x1d2   :  { %376 = shalt.err (!%p373_p1)
}
 0x1d3   :  { %223 = dma.vmem_to_hbm [thread:$0]  %s221_s12, 128, %s546_s5, [#allocation3]  }
 0x1d4   :  { %s408_s30 = smov [#allocation6]  }
 0x1d5   :  { %s240_s9 = sshll.u32 %s408_s30, 4  ;;  %s241_s9 = int_to_ptr.vmem [resolvable:$true] %s240_s9 }
 0x1d6   :  { %s377_s0 = scalar_lea.vmem %s241_s9, 128  ;;  %p382_p3 = scmp.lt.s32.totalorder %s241_s9, %s241_s9 }
 0x1d7   :  { %p378_p2 = scmp.ne.s32.totalorder %s241_s9, %s377_s0  ;;  %p383_p4 = scmp.lt.s32.totalorder %s377_s0, %s377_s0 }
 0x1d9   :  { %p384_p5 = por %p383_p4, %p382_p3 }
 0x1db   :  { %p385_p6 = pnand %p384_p5, %p378_p2 }
 0x1dd   :  { %388 = shalt.err (!%p385_p6)
}
 0x1de   :  { %s389_s3 = scalar_lea.hbm %s548_s7, 128 }
 0x1df   :  { %p390_p7 = scmp.ne.s32.totalorder %s548_s7, %s389_s3  ;;  %p393_p8 = scmp.lt.u32.totalorder %s389_s3, %s548_s7 }
 0x1e1   :  { %p395_p9 = pnand %p393_p8, %p390_p7 }
 0x1e3   :  { %398 = shalt.err (!%p395_p9)
}
 0x1e4   :  { %243 = dma.vmem_to_hbm [thread:$0]  %s241_s9, 128, %s548_s7, [#allocation5]  }
 0x249   :  { %v206_v32 = vpop.xlane.xlu0 %205 }
 0x24a   :  { %v207_v33 = vmax.f32 %v206_v32, 1e-24 }
 0x24c   :  { %331 = vrsqrt.f32 %v207_v33 }
 0x256   :  { %v332_v34 = vpop.eup %331 }
 0x257   :  { %v209_v35 = vmul.f32 %v332_v34, %v199_v28 }
 0x259   :  { %213 = vst.msk [vmem:[%s549_s8] sm:$0xff] %vm203_vm3, %v209_v35 }
 0x25a   :  { %399 = dma.done.wait [#allocation3], 128  }
 0x25b   :  { %400 = vsyncadd [#allocation3], 4294967168 }
 0x25c   :  { %401 = dma.done.wait [#allocation5], 256  }
 0x25d   :  { %402 = vsyncadd [#allocation5], 4294967040 }
 0x25e   :  { %257 = vsyncpa [#allocation3], 1 }
 0x25f   :  { %258 = vsyncpa [#allocation5], 1 }

</bundles_post_ra>
